<compile_context>
chip_gen: v5e
topology: v5e:2x2
jax: 0.10.0
libtpu: 0.0.40
codegen_flags: <defaults>
</compile_context>

<pallas_src>
import functools
import math

import jax
import jax.numpy as jnp
from jax.experimental import pallas as pl
from jax.experimental.pallas import tpu as pltpu


def _round_up(x: int, n: int) -> int:
    return ((x + n - 1) // n) * n


def _cdiv(a: int, b: int) -> int:
    return (a + b - 1) // b


# --------------------------------------------------------------------------- kernel
def _encoder_kernel(x_ref, w1_ref, b1_ref, w2_ref, b2_ref, w3_ref, b3_ref, o_ref,
                    *, lane_dense):
    """Fused 3-layer MLP on one row tile.

    The f32 -> compute-dtype cast of x happens here (not in the wrapper) so x is read
    from HBM exactly once.  Matmuls hit the MXU in the compute dtype with f32
    accumulation; bias add + ReLU run on the f32 accumulator on the VPU.
    """
    cdt = w1_ref.dtype
    x = x_ref[...].astype(cdt)
    h = jnp.dot(x, w1_ref[...], preferred_element_type=jnp.float32)
    h = jnp.maximum(h + b1_ref[...], 0.0)
    h = jnp.dot(h.astype(cdt), w2_ref[...], preferred_element_type=jnp.float32)
    h = jnp.maximum(h + b2_ref[...], 0.0)
    h = jnp.dot(h.astype(cdt), w3_ref[...], preferred_element_type=jnp.float32)
    h = jnp.maximum(h + b3_ref[...], 0.0)
    if lane_dense:
        # Repack the narrow (tm, out) result into a lane-dense (tm*out/128, 128) tile
        # so the store path issues full-width vst's instead of masked partial stores.
        o_ref[...] = h.reshape(o_ref.shape).astype(o_ref.dtype)
    else:
        o_ref[...] = h.astype(o_ref.dtype)


# ------------------------------------------------------------------- tile selection
def _select_row_tile(m: int, tm_max: int) -> int:
    if m <= 16:
        return m  # single full-extent block (escape hatch for the (8,128) rule)
    # Aim for >= 4 grid steps (hides pipeline warm-up/drain; >= 2 iters per v7x core),
    # with a 512-row floor (already ~85% of HBM roofline) and 16-row alignment (bf16
    # sublane packing), capped by the requested max tile and the problem size.
    target = max(512, _round_up(_cdiv(m, 4), 16))
    tm_eff = min(_round_up(tm_max, 16), target, _round_up(m, 16))
    return max(tm_eff, 16)


# --------------------------------------------------------------------------- wrapper
@functools.partial(jax.jit,
                   static_argnames=("tm", "lane_dense", "single_buffer_weights"))
def _encoder_forward_impl(x, w1, b1, w2, b2, w3, b3, *,
                          tm, lane_dense, single_buffer_weights):
    in_size, hid_size = w1.shape
    out_size = w3.shape[1]
    orig_shape = x.shape
    x2d = x.reshape(-1, in_size)          # dtype unchanged; cast to compute dtype in-kernel
    m = x2d.shape[0]
    xbpe = x2d.dtype.itemsize
    cbpe = jnp.dtype(w1.dtype).itemsize

    tm_eff = _select_row_tile(m, int(tm))

    # ---- Generation-aware VMEM budget (weight-resident design) ----
    try:
        vmem_cap = int(pltpu.get_tpu_info().vmem_capacity_bytes)
    except Exception:
        vmem_cap = 64 * 1024 * 1024       # conservative fallback (v7x per-core VMEM)
    vmem_budget = int(vmem_cap * 0.85)    # headroom for Mosaic internal scratch/spills

    w_copies = 1 if single_buffer_weights else 2
    w_bytes = (in_size * hid_size + hid_size * hid_size
               + hid_size * out_size) * cbpe * w_copies
    b_bytes = (2 * hid_size + out_size) * 4 * w_copies

    def vmem_estimate(t):
        io = 2 * t * in_size * xbpe + 2 * t * out_size * 4    # double-buffered x / out
        act = (t * in_size * cbpe                              # compute-dtype cast of x
               + 2 * t * hid_size * 4                          # two live f32 intermediates
               + 2 * t * hid_size * cbpe                       # their MXU-input re-casts
               + t * out_size * 4)                             # f32 result before store
        return w_bytes + b_bytes + io + act + (1 << 20)        # +1 MiB slack

    while vmem_estimate(tm_eff) > vmem_budget and tm_eff > 256:
        tm_eff = max(256, _round_up(tm_eff // 2, 16))
    if vmem_estimate(tm_eff) > vmem_budget:
        # TODO(synk): tile hidden_size over a second "arbitrary" grid axis with an f32
        # VMEM accumulator instead of keeping all weights resident (needed for very
        # large hidden sizes on v7x's 64 MiB VMEM).
        raise ValueError(
            f"Weight-resident encoder kernel needs ~{vmem_estimate(tm_eff) >> 20} MiB "
            f"VMEM (budget {vmem_budget >> 20} MiB); tile the hidden dimension instead.")

    grid_m = _cdiv(m, tm_eff)
    vmem_limit = int(min(vmem_budget, max(2 * vmem_estimate(tm_eff), 32 * 1024 * 1024)))

    # Lane-dense repack is only valid when each row-tile flattens into whole (8,128)
    # vregs; tiny problems fall back to the direct (m, out) layout.
    lane_dense = bool(lane_dense) and (tm_eff * out_size) % (8 * 128) == 0

    if lane_dense:
        rows_per_blk = (tm_eff * out_size) // 128
        out_shape = jax.ShapeDtypeStruct((grid_m * rows_per_blk, 128), jnp.float32)
        out_spec = pl.BlockSpec((rows_per_blk, 128), lambda i: (i, 0))
    else:
        out_shape = jax.ShapeDtypeStruct((m, out_size), jnp.float32)
        out_spec = pl.BlockSpec((tm_eff, out_size), lambda i: (i, 0))

    # Resident weights/biases never change across the grid -> single buffer.
    wkw = dict(pipeline_mode=pl.Buffered(1)) if single_buffer_weights else {}
    in_specs = [
        pl.BlockSpec((tm_eff, in_size), lambda i: (i, 0)),            # x row tile (f32)
        pl.BlockSpec((in_size, hid_size), lambda i: (0, 0), **wkw),   # W1 (resident)
        pl.BlockSpec((1, hid_size), lambda i: (0, 0), **wkw),         # b1
        pl.BlockSpec((hid_size, hid_size), lambda i: (0, 0), **wkw),  # W2 (resident)
        pl.BlockSpec((1, hid_size), lambda i: (0, 0), **wkw),         # b2
        pl.BlockSpec((hid_size, out_size), lambda i: (0, 0), **wkw),  # W3 (resident)
        pl.BlockSpec((1, out_size), lambda i: (0, 0), **wkw),         # b3
    ]

    flops = 2 * m * (in_size * hid_size + hid_size * hid_size + hid_size * out_size)
    bytes_accessed = (m * in_size * xbpe + m * out_size * 4
                      + (in_size * hid_size + hid_size * hid_size
                         + hid_size * out_size) * cbpe
                      + (2 * hid_size + out_size) * 4)
    cost = pl.CostEstimate(flops=flops, bytes_accessed=bytes_accessed, transcendentals=0)

    out_raw = pl.pallas_call(
        functools.partial(_encoder_kernel, lane_dense=lane_dense),
        out_shape=out_shape,
        grid_spec=pltpu.PrefetchScalarGridSpec(
            num_scalar_prefetch=0,
            grid=(grid_m,),
            in_specs=in_specs,
            out_specs=out_spec,
        ),
        compiler_params=pltpu.CompilerParams(
            dimension_semantics=("parallel",),
            vmem_limit_bytes=vmem_limit,
        ),
        cost_estimate=cost,
    )(x2d, w1, b1, w2, b2, w3, b3)

    if lane_dense:
        out2d = out_raw.reshape(grid_m * tm_eff, out_size)   # free: contiguous row-major
        if grid_m * tm_eff != m:
            out2d = out2d[:m]   # drop padding rows of the ragged last block
    else:
        out2d = out_raw
    return out2d.reshape(tuple(orig_shape[:-1]) + (out_size,))


def prepare_encoder_params(params, compute_dtype=jnp.bfloat16):
    """Cast weights to the MXU compute dtype and reshape biases to (1, n) f32 rows.

    Idempotent and a no-op on already-prepared params.  Call once and reuse so the
    weight cast (an extra HBM pass) is not paid on every forward call.
    """
    w1, b1, w2, b2, w3, b3 = params

    def _w(a):
        return a if a.dtype == jnp.dtype(compute_dtype) else jnp.asarray(a, compute_dtype)

    def _b(a):
        a = a if a.dtype == jnp.float32 else jnp.asarray(a, jnp.float32)
        return a if a.ndim == 2 else a.reshape(1, -1)

    return (_w(w1), _b(b1), _w(w2), _b(b2), _w(w3), _b(b3))


# Graded fallback: the lane-dense sublane->lane output reshape and Buffered(1)
# single-buffering are the most Mosaic-version-sensitive features; probe once and
# cache the first configuration that compiles so the kernel always runs.
_CONFIGS = (
    dict(lane_dense=True, single_buffer_weights=True),
    dict(lane_dense=True, single_buffer_weights=False),
    dict(lane_dense=False, single_buffer_weights=True),
    dict(lane_dense=False, single_buffer_weights=False),
)
_config_start = 0


def encoder_forward(x, params, tm=1024, compute_dtype=jnp.bfloat16):
    """x: (..., input_size) -> (..., output_size) float32.

    `params` may be raw f32 (w, b) tuples or (preferably) the result of
    `prepare_encoder_params`, so the weight cast happens once, not per call.
    """
    global _config_start
    prepped = prepare_encoder_params(params, compute_dtype)
    last_err = None
    for idx in range(_config_start, len(_CONFIGS)):
        try:
            out = _encoder_forward_impl(x, *prepped, tm=int(tm), **_CONFIGS[idx])
            _config_start = idx
            return out
        except Exception as err:   # lowering / compile failure -> try a safer config
            last_err = err
    raise last_err


# ------------------------------------------------------------------------ init / ref
def init_encoder_params(key, input_size, hidden_size, output_size):
    """Deterministic PyTorch-style (Kaiming-uniform-ish) Linear init.
    Weights stored as (in, out); PyTorch stores (out, in) and applies x @ W.T."""
    def linear(key, fan_in, fan_out):
        kw, kb = jax.random.split(key)
        bound = 1.0 / math.sqrt(fan_in)
        w = jax.random.uniform(kw, (fan_in, fan_out), jnp.float32, -bound, bound)
        b = jax.random.uniform(kb, (1, fan_out), jnp.float32, -bound, bound)
        return w, b

    k1, k2, k3 = jax.random.split(key, 3)
    w1, b1 = linear(k1, input_size, hidden_size)
    w2, b2 = linear(k2, hidden_size, hidden_size)
    w3, b3 = linear(k3, hidden_size, output_size)
    return (w1, b1, w2, b2, w3, b3)


def _reference_forward(x, params, compute_dtype=jnp.bfloat16):
    # Mirrors the kernel's numerics: bf16 operands, f32 accumulation, f32 bias/ReLU.
    w1, b1, w2, b2, w3, b3 = params
    s = x.shape
    h = x.reshape(-1, s[-1]).astype(compute_dtype)
    w1c, w2c, w3c = (w.astype(compute_dtype) for w in (w1, w2, w3))
    b1r, b2r, b3r = (b.reshape(1, -1) for b in (b1, b2, b3))
    h = jnp.maximum(jnp.dot(h, w1c, preferred_element_type=jnp.float32) + b1r, 0.0)
    h = jnp.maximum(
        jnp.dot(h.astype(compute_dtype), w2c, preferred_element_type=jnp.float32) + b2r, 0.0)
    h = jnp.maximum(
        jnp.dot(h.astype(compute_dtype), w3c, preferred_element_type=jnp.float32) + b3r, 0.0)
    return h.reshape(tuple(s[:-1]) + (w3.shape[1],))


if __name__ == "__main__":
    input_size, hidden_size, output_size = 16, 32, 8
    key = jax.random.PRNGKey(0)
    k_params, k_x1, k_x2, k_x3 = jax.random.split(key, 4)

    params = init_encoder_params(k_params, input_size, hidden_size, output_size)
    # Cast weights to bf16 once, outside the per-call path.
    pparams = prepare_encoder_params(params)

    def check(x, name):
        out = jax.block_until_ready(encoder_forward(x, pparams))
        ref = _reference_forward(x, params)
        assert out.shape == tuple(x.shape[:-1]) + (output_size,), (name, out.shape)
        assert jnp.allclose(out, ref, rtol=2e-2, atol=2e-2), f"mismatch vs reference ({name})"

    # Case 1: tiny (batch, seq, in) -> single full-extent block.
    check(jax.random.normal(k_x1, (2, 4, input_size), dtype=jnp.float32), "case1")
    # Case 2: ragged tiny row count (15 rows) -> full-extent block, odd sublane count.
    check(jax.random.normal(k_x2, (3, 5, input_size), dtype=jnp.float32), "case2")
    # Case 3: medium (4*260 = 1040 rows) -> multi-step grid with 512-row tiles, ragged
    # last block, lane-dense output repack and single-buffered resident weights.
    check(jax.random.normal(k_x3, (4, 260, input_size), dtype=jnp.float32), "case3")

    print("KERNEL_OK")
</pallas_src>

<mosaic_0001>
module attributes {stable_mosaic.version = 11 : i64} {
  func.func @_encoder_kernel(%arg0: i32, %arg1: memref<8x16xf32, #tpu.memory_space<vmem>>, %arg2: memref<16x32xbf16, #tpu.memory_space<vmem>>, %arg3: memref<1x32xf32, #tpu.memory_space<vmem>>, %arg4: memref<32x32xbf16, #tpu.memory_space<vmem>>, %arg5: memref<1x32xf32, #tpu.memory_space<vmem>>, %arg6: memref<32x8xbf16, #tpu.memory_space<vmem>>, %arg7: memref<1x8xf32, #tpu.memory_space<vmem>>, %arg8: memref<8x8xf32, #tpu.memory_space<vmem>>) attributes {dimension_semantics = [#tpu.dimension_semantics<parallel>], iteration_bounds = array<i64: 1>, scalar_prefetch = 0 : i64, scratch_operands = 0 : i64, tpu.core_type = #tpu.core_type<tc>, window_params = [{transform_indices = @transform_0, window_bounds = array<i64: 8, 16>}, {pipeline_mode = #tpu.pipeline_mode<synchronous>, transform_indices = @transform_1, window_bounds = array<i64: 16, 32>}, {pipeline_mode = #tpu.pipeline_mode<synchronous>, transform_indices = @transform_2, window_bounds = array<i64: 1, 32>}, {pipeline_mode = #tpu.pipeline_mode<synchronous>, transform_indices = @transform_3, window_bounds = array<i64: 32, 32>}, {pipeline_mode = #tpu.pipeline_mode<synchronous>, transform_indices = @transform_4, window_bounds = array<i64: 1, 32>}, {pipeline_mode = #tpu.pipeline_mode<synchronous>, transform_indices = @transform_5, window_bounds = array<i64: 32, 8>}, {pipeline_mode = #tpu.pipeline_mode<synchronous>, transform_indices = @transform_6, window_bounds = array<i64: 1, 8>}, {transform_indices = @transform_7, window_bounds = array<i64: 8, 8>}]} {
    %c0 = arith.constant 0 : index
    %c0_0 = arith.constant 0 : index
    %0 = vector.load %arg1[%c0, %c0_0] : memref<8x16xf32, #tpu.memory_space<vmem>>, vector<8x16xf32>
    %1 = arith.truncf %0 : vector<8x16xf32> to vector<8x16xbf16>
    %c0_1 = arith.constant 0 : index
    %c0_2 = arith.constant 0 : index
    %2 = vector.load %arg2[%c0_1, %c0_2] : memref<16x32xbf16, #tpu.memory_space<vmem>>, vector<16x32xbf16>
    %cst = arith.constant dense<0.000000e+00> : vector<8x32xf32>
    %3 = tpu.matmul %1, %2, %cst {dimension_numbers = #tpu.dot_dimension_numbers<[1], [0], [0], [1], [0, 0, 1, 1], [], []>} : vector<8x16xbf16>, vector<16x32xbf16>, vector<8x32xf32> -> vector<8x32xf32>
    %c0_3 = arith.constant 0 : index
    %c0_4 = arith.constant 0 : index
    %4 = vector.load %arg3[%c0_3, %c0_4] : memref<1x32xf32, #tpu.memory_space<vmem>>, vector<1x32xf32>
    %5 = vector.broadcast %4 : vector<1x32xf32> to vector<8x32xf32>
    %6 = arith.addf %3, %5 : vector<8x32xf32>
    %cst_5 = arith.constant 0.000000e+00 : f32
    %7 = vector.broadcast %cst_5 : f32 to vector<8x32xf32>
    %8 = arith.maximumf %6, %7 : vector<8x32xf32>
    %9 = arith.truncf %8 : vector<8x32xf32> to vector<8x32xbf16>
    %c0_6 = arith.constant 0 : index
    %c0_7 = arith.constant 0 : index
    %10 = vector.load %arg4[%c0_6, %c0_7] : memref<32x32xbf16, #tpu.memory_space<vmem>>, vector<32x32xbf16>
    %cst_8 = arith.constant dense<0.000000e+00> : vector<8x32xf32>
    %11 = tpu.matmul %9, %10, %cst_8 {dimension_numbers = #tpu.dot_dimension_numbers<[1], [0], [0], [1], [0, 0, 1, 1], [], []>} : vector<8x32xbf16>, vector<32x32xbf16>, vector<8x32xf32> -> vector<8x32xf32>
    %c0_9 = arith.constant 0 : index
    %c0_10 = arith.constant 0 : index
    %12 = vector.load %arg5[%c0_9, %c0_10] : memref<1x32xf32, #tpu.memory_space<vmem>>, vector<1x32xf32>
    %13 = vector.broadcast %12 : vector<1x32xf32> to vector<8x32xf32>
    %14 = arith.addf %11, %13 : vector<8x32xf32>
    %cst_11 = arith.constant 0.000000e+00 : f32
    %15 = vector.broadcast %cst_11 : f32 to vector<8x32xf32>
    %16 = arith.maximumf %14, %15 : vector<8x32xf32>
    %17 = arith.truncf %16 : vector<8x32xf32> to vector<8x32xbf16>
    %c0_12 = arith.constant 0 : index
    %c0_13 = arith.constant 0 : index
    %18 = vector.load %arg6[%c0_12, %c0_13] : memref<32x8xbf16, #tpu.memory_space<vmem>>, vector<32x8xbf16>
    %cst_14 = arith.constant dense<0.000000e+00> : vector<8x8xf32>
    %19 = tpu.matmul %17, %18, %cst_14 {dimension_numbers = #tpu.dot_dimension_numbers<[1], [0], [0], [1], [0, 0, 1, 1], [], []>} : vector<8x32xbf16>, vector<32x8xbf16>, vector<8x8xf32> -> vector<8x8xf32>
    %c0_15 = arith.constant 0 : index
    %c0_16 = arith.constant 0 : index
    %20 = vector.load %arg7[%c0_15, %c0_16] : memref<1x8xf32, #tpu.memory_space<vmem>>, vector<1x8xf32>
    %21 = vector.broadcast %20 : vector<1x8xf32> to vector<8x8xf32>
    %22 = arith.addf %19, %21 : vector<8x8xf32>
    %cst_17 = arith.constant 0.000000e+00 : f32
    %23 = vector.broadcast %cst_17 : f32 to vector<8x8xf32>
    %24 = arith.maximumf %22, %23 : vector<8x8xf32>
    %c0_18 = arith.constant 0 : index
    %c0_19 = arith.constant 0 : index
    %25 = vector.load %arg8[%c0_18, %c0_19] : memref<8x8xf32, #tpu.memory_space<vmem>>, vector<8x8xf32>
    tpu.vector_store %arg8[%c0_18, %c0_19], %24 {strides = array<i32>} : memref<8x8xf32, #tpu.memory_space<vmem>>, vector<8x8xf32>,
    return
  }
  func.func @transform_0(%arg0: i32) -> (i32, i32) {
    %c0_i32 = arith.constant 0 : i32
    %c0_i32_0 = arith.constant 0 : i32
    return %arg0, %c0_i32 : i32, i32
  }
  func.func @transform_1(%arg0: i32) -> (i32, i32) {
    %c0_i32 = arith.constant 0 : i32
    %c0_i32_0 = arith.constant 0 : i32
    %c0_i32_1 = arith.constant 0 : i32
    return %c0_i32, %c0_i32_0 : i32, i32
  }
  func.func @transform_2(%arg0: i32) -> (i32, i32) {
    %c0_i32 = arith.constant 0 : i32
    %c0_i32_0 = arith.constant 0 : i32
    %c0_i32_1 = arith.constant 0 : i32
    return %c0_i32, %c0_i32_0 : i32, i32
  }
  func.func @transform_3(%arg0: i32) -> (i32, i32) {
    %c0_i32 = arith.constant 0 : i32
    %c0_i32_0 = arith.constant 0 : i32
    %c0_i32_1 = arith.constant 0 : i32
    return %c0_i32, %c0_i32_0 : i32, i32
  }
  func.func @transform_4(%arg0: i32) -> (i32, i32) {
    %c0_i32 = arith.constant 0 : i32
    %c0_i32_0 = arith.constant 0 : i32
    %c0_i32_1 = arith.constant 0 : i32
    return %c0_i32, %c0_i32_0 : i32, i32
  }
  func.func @transform_5(%arg0: i32) -> (i32, i32) {
    %c0_i32 = arith.constant 0 : i32
    %c0_i32_0 = arith.constant 0 : i32
    %c0_i32_1 = arith.constant 0 : i32
    return %c0_i32, %c0_i32_0 : i32, i32
  }
  func.func @transform_6(%arg0: i32) -> (i32, i32) {
    %c0_i32 = arith.constant 0 : i32
    %c0_i32_0 = arith.constant 0 : i32
    %c0_i32_1 = arith.constant 0 : i32
    return %c0_i32, %c0_i32_0 : i32, i32
  }
  func.func @transform_7(%arg0: i32) -> (i32, i32) {
    %c0_i32 = arith.constant 0 : i32
    %c0_i32_0 = arith.constant 0 : i32
    return %arg0, %c0_i32 : i32, i32
  }
}

module attributes {stable_mosaic.version = 11 : i64} {
  func.func @_encoder_kernel(%arg0: i32, %arg1: memref<8x16xf32, #tpu.memory_space<vmem>>, %arg2: memref<16x32xbf16, #tpu.memory_space<vmem>>, %arg3: memref<1x32xf32, #tpu.memory_space<vmem>>, %arg4: memref<32x32xbf16, #tpu.memory_space<vmem>>, %arg5: memref<1x32xf32, #tpu.memory_space<vmem>>, %arg6: memref<32x8xbf16, #tpu.memory_space<vmem>>, %arg7: memref<1x8xf32, #tpu.memory_space<vmem>>, %arg8: memref<8x8xf32, #tpu.memory_space<vmem>>) attributes {dimension_semantics = [#tpu.dimension_semantics<parallel>], iteration_bounds = array<i64: 1>, scalar_prefetch = 0 : i64, scratch_operands = 0 : i64, tpu.core_type = #tpu.core_type<tc>, window_params = [{transform_indices = @transform_0, window_bounds = array<i64: 8, 16>}, {pipeline_mode = #tpu.pipeline_mode<synchronous>, transform_indices = @transform_1, window_bounds = array<i64: 16, 32>}, {pipeline_mode = #tpu.pipeline_mode<synchronous>, transform_indices = @transform_2, window_bounds = array<i64: 1, 32>}, {pipeline_mode = #tpu.pipeline_mode<synchronous>, transform_indices = @transform_3, window_bounds = array<i64: 32, 32>}, {pipeline_mode = #tpu.pipeline_mode<synchronous>, transform_indices = @transform_4, window_bounds = array<i64: 1, 32>}, {pipeline_mode = #tpu.pipeline_mode<synchronous>, transform_indices = @transform_5, window_bounds = array<i64: 32, 8>}, {pipeline_mode = #tpu.pipeline_mode<synchronous>, transform_indices = @transform_6, window_bounds = array<i64: 1, 8>}, {transform_indices = @transform_7, window_bounds = array<i64: 8, 8>}]} {
    %c0 = arith.constant 0 : index
    %c0_0 = arith.constant 0 : index
    %0 = vector.load %arg1[%c0, %c0_0] : memref<8x16xf32, #tpu.memory_space<vmem>>, vector<8x16xf32>
    %1 = arith.truncf %0 : vector<8x16xf32> to vector<8x16xbf16>
    %c0_1 = arith.constant 0 : index
    %c0_2 = arith.constant 0 : index
    %2 = vector.load %arg2[%c0_1, %c0_2] : memref<16x32xbf16, #tpu.memory_space<vmem>>, vector<16x32xbf16>
    %cst = arith.constant dense<0.000000e+00> : vector<8x32xf32>
    %3 = tpu.matmul %1, %2, %cst {dimension_numbers = #tpu.dot_dimension_numbers<[1], [0], [0], [1], [0, 0, 1, 1], [], []>} : vector<8x16xbf16>, vector<16x32xbf16>, vector<8x32xf32> -> vector<8x32xf32>
    %c0_3 = arith.constant 0 : index
    %c0_4 = arith.constant 0 : index
    %4 = vector.load %arg3[%c0_3, %c0_4] : memref<1x32xf32, #tpu.memory_space<vmem>>, vector<1x32xf32>
    %5 = vector.broadcast %4 : vector<1x32xf32> to vector<8x32xf32>
    %6 = arith.addf %3, %5 : vector<8x32xf32>
    %cst_5 = arith.constant 0.000000e+00 : f32
    %7 = vector.broadcast %cst_5 : f32 to vector<8x32xf32>
    %8 = arith.maximumf %6, %7 : vector<8x32xf32>
    %9 = arith.truncf %8 : vector<8x32xf32> to vector<8x32xbf16>
    %c0_6 = arith.constant 0 : index
    %c0_7 = arith.constant 0 : index
    %10 = vector.load %arg4[%c0_6, %c0_7] : memref<32x32xbf16, #tpu.memory_space<vmem>>, vector<32x32xbf16>
    %cst_8 = arith.constant dense<0.000000e+00> : vector<8x32xf32>
    %11 = tpu.matmul %9, %10, %cst_8 {dimension_numbers = #tpu.dot_dimension_numbers<[1], [0], [0], [1], [0, 0, 1, 1], [], []>} : vector<8x32xbf16>, vector<32x32xbf16>, vector<8x32xf32> -> vector<8x32xf32>
    %c0_9 = arith.constant 0 : index
    %c0_10 = arith.constant 0 : index
    %12 = vector.load %arg5[%c0_9, %c0_10] : memref<1x32xf32, #tpu.memory_space<vmem>>, vector<1x32xf32>
    %13 = vector.broadcast %12 : vector<1x32xf32> to vector<8x32xf32>
    %14 = arith.addf %11, %13 : vector<8x32xf32>
    %cst_11 = arith.constant 0.000000e+00 : f32
    %15 = vector.broadcast %cst_11 : f32 to vector<8x32xf32>
    %16 = arith.maximumf %14, %15 : vector<8x32xf32>
    %17 = arith.truncf %16 : vector<8x32xf32> to vector<8x32xbf16>
    %c0_12 = arith.constant 0 : index
    %c0_13 = arith.constant 0 : index
    %18 = vector.load %arg6[%c0_12, %c0_13] : memref<32x8xbf16, #tpu.memory_space<vmem>>, vector<32x8xbf16>
    %cst_14 = arith.constant dense<0.000000e+00> : vector<8x8xf32>
    %19 = tpu.matmul %17, %18, %cst_14 {dimension_numbers = #tpu.dot_dimension_numbers<[1], [0], [0], [1], [0, 0, 1, 1], [], []>} : vector<8x32xbf16>, vector<32x8xbf16>, vector<8x8xf32> -> vector<8x8xf32>
    %c0_15 = arith.constant 0 : index
    %c0_16 = arith.constant 0 : index
    %20 = vector.load %arg7[%c0_15, %c0_16] : memref<1x8xf32, #tpu.memory_space<vmem>>, vector<1x8xf32>
    %21 = vector.broadcast %20 : vector<1x8xf32> to vector<8x8xf32>
    %22 = arith.addf %19, %21 : vector<8x8xf32>
    %cst_17 = arith.constant 0.000000e+00 : f32
    %23 = vector.broadcast %cst_17 : f32 to vector<8x8xf32>
    %24 = arith.maximumf %22, %23 : vector<8x8xf32>
    %c0_18 = arith.constant 0 : index
    %c0_19 = arith.constant 0 : index
    %25 = vector.load %arg8[%c0_18, %c0_19] : memref<8x8xf32, #tpu.memory_space<vmem>>, vector<8x8xf32>
    tpu.vector_store %arg8[%c0_18, %c0_19], %24 {strides = array<i32>} : memref<8x8xf32, #tpu.memory_space<vmem>>, vector<8x8xf32>,
    return
  }
  func.func @transform_0(%arg0: i32) -> (i32, i32) {
    %c0_i32 = arith.constant 0 : i32
    %c0_i32_0 = arith.constant 0 : i32
    return %arg0, %c0_i32 : i32, i32
  }
  func.func @transform_1(%arg0: i32) -> (i32, i32) {
    %c0_i32 = arith.constant 0 : i32
    %c0_i32_0 = arith.constant 0 : i32
    %c0_i32_1 = arith.constant 0 : i32
    return %c0_i32, %c0_i32_0 : i32, i32
  }
  func.func @transform_2(%arg0: i32) -> (i32, i32) {
    %c0_i32 = arith.constant 0 : i32
    %c0_i32_0 = arith.constant 0 : i32
    %c0_i32_1 = arith.constant 0 : i32
    return %c0_i32, %c0_i32_0 : i32, i32
  }
  func.func @transform_3(%arg0: i32) -> (i32, i32) {
    %c0_i32 = arith.constant 0 : i32
    %c0_i32_0 = arith.constant 0 : i32
    %c0_i32_1 = arith.constant 0 : i32
    return %c0_i32, %c0_i32_0 : i32, i32
  }
  func.func @transform_4(%arg0: i32) -> (i32, i32) {
    %c0_i32 = arith.constant 0 : i32
    %c0_i32_0 = arith.constant 0 : i32
    %c0_i32_1 = arith.constant 0 : i32
    return %c0_i32, %c0_i32_0 : i32, i32
  }
  func.func @transform_5(%arg0: i32) -> (i32, i32) {
    %c0_i32 = arith.constant 0 : i32
    %c0_i32_0 = arith.constant 0 : i32
    %c0_i32_1 = arith.constant 0 : i32
    return %c0_i32, %c0_i32_0 : i32, i32
  }
  func.func @transform_6(%arg0: i32) -> (i32, i32) {
    %c0_i32 = arith.constant 0 : i32
    %c0_i32_0 = arith.constant 0 : i32
    %c0_i32_1 = arith.constant 0 : i32
    return %c0_i32, %c0_i32_0 : i32, i32
  }
  func.func @transform_7(%arg0: i32) -> (i32, i32) {
    %c0_i32 = arith.constant 0 : i32
    %c0_i32_0 = arith.constant 0 : i32
    return %arg0, %c0_i32 : i32, i32
  }
}

module attributes {stable_mosaic.version = 11 : i64} {
  func.func @_encoder_kernel(%arg0: i32, %arg1: memref<8x16xf32, #tpu.memory_space<vmem>>, %arg2: memref<16x32xbf16, #tpu.memory_space<vmem>>, %arg3: memref<1x32xf32, #tpu.memory_space<vmem>>, %arg4: memref<32x32xbf16, #tpu.memory_space<vmem>>, %arg5: memref<1x32xf32, #tpu.memory_space<vmem>>, %arg6: memref<32x8xbf16, #tpu.memory_space<vmem>>, %arg7: memref<1x8xf32, #tpu.memory_space<vmem>>, %arg8: memref<8x8xf32, #tpu.memory_space<vmem>>) attributes {dimension_semantics = [#tpu.dimension_semantics<parallel>], iteration_bounds = array<i64: 1>, scalar_prefetch = 0 : i64, scratch_operands = 0 : i64, tpu.core_type = #tpu.core_type<tc>, window_params = [{transform_indices = @transform_0, window_bounds = array<i64: 8, 16>}, {pipeline_mode = #tpu.pipeline_mode<synchronous>, transform_indices = @transform_1, window_bounds = array<i64: 16, 32>}, {pipeline_mode = #tpu.pipeline_mode<synchronous>, transform_indices = @transform_2, window_bounds = array<i64: 1, 32>}, {pipeline_mode = #tpu.pipeline_mode<synchronous>, transform_indices = @transform_3, window_bounds = array<i64: 32, 32>}, {pipeline_mode = #tpu.pipeline_mode<synchronous>, transform_indices = @transform_4, window_bounds = array<i64: 1, 32>}, {pipeline_mode = #tpu.pipeline_mode<synchronous>, transform_indices = @transform_5, window_bounds = array<i64: 32, 8>}, {pipeline_mode = #tpu.pipeline_mode<synchronous>, transform_indices = @transform_6, window_bounds = array<i64: 1, 8>}, {transform_indices = @transform_7, window_bounds = array<i64: 8, 8>}]} {
    %c0 = arith.constant 0 : index
    %c0_0 = arith.constant 0 : index
    %0 = vector.load %arg1[%c0, %c0_0] : memref<8x16xf32, #tpu.memory_space<vmem>>, vector<8x16xf32>
    %1 = arith.truncf %0 : vector<8x16xf32> to vector<8x16xbf16>
    %c0_1 = arith.constant 0 : index
    %c0_2 = arith.constant 0 : index
    %2 = vector.load %arg2[%c0_1, %c0_2] : memref<16x32xbf16, #tpu.memory_space<vmem>>, vector<16x32xbf16>
    %cst = arith.constant dense<0.000000e+00> : vector<8x32xf32>
    %3 = tpu.matmul %1, %2, %cst {dimension_numbers = #tpu.dot_dimension_numbers<[1], [0], [0], [1], [0, 0, 1, 1], [], []>} : vector<8x16xbf16>, vector<16x32xbf16>, vector<8x32xf32> -> vector<8x32xf32>
    %c0_3 = arith.constant 0 : index
    %c0_4 = arith.constant 0 : index
    %4 = vector.load %arg3[%c0_3, %c0_4] : memref<1x32xf32, #tpu.memory_space<vmem>>, vector<1x32xf32>
    %5 = vector.broadcast %4 : vector<1x32xf32> to vector<8x32xf32>
    %6 = arith.addf %3, %5 : vector<8x32xf32>
    %cst_5 = arith.constant 0.000000e+00 : f32
    %7 = vector.broadcast %cst_5 : f32 to vector<8x32xf32>
    %8 = arith.maximumf %6, %7 : vector<8x32xf32>
    %9 = arith.truncf %8 : vector<8x32xf32> to vector<8x32xbf16>
    %c0_6 = arith.constant 0 : index
    %c0_7 = arith.constant 0 : index
    %10 = vector.load %arg4[%c0_6, %c0_7] : memref<32x32xbf16, #tpu.memory_space<vmem>>, vector<32x32xbf16>
    %cst_8 = arith.constant dense<0.000000e+00> : vector<8x32xf32>
    %11 = tpu.matmul %9, %10, %cst_8 {dimension_numbers = #tpu.dot_dimension_numbers<[1], [0], [0], [1], [0, 0, 1, 1], [], []>} : vector<8x32xbf16>, vector<32x32xbf16>, vector<8x32xf32> -> vector<8x32xf32>
    %c0_9 = arith.constant 0 : index
    %c0_10 = arith.constant 0 : index
    %12 = vector.load %arg5[%c0_9, %c0_10] : memref<1x32xf32, #tpu.memory_space<vmem>>, vector<1x32xf32>
    %13 = vector.broadcast %12 : vector<1x32xf32> to vector<8x32xf32>
    %14 = arith.addf %11, %13 : vector<8x32xf32>
    %cst_11 = arith.constant 0.000000e+00 : f32
    %15 = vector.broadcast %cst_11 : f32 to vector<8x32xf32>
    %16 = arith.maximumf %14, %15 : vector<8x32xf32>
    %17 = arith.truncf %16 : vector<8x32xf32> to vector<8x32xbf16>
    %c0_12 = arith.constant 0 : index
    %c0_13 = arith.constant 0 : index
    %18 = vector.load %arg6[%c0_12, %c0_13] : memref<32x8xbf16, #tpu.memory_space<vmem>>, vector<32x8xbf16>
    %cst_14 = arith.constant dense<0.000000e+00> : vector<8x8xf32>
    %19 = tpu.matmul %17, %18, %cst_14 {dimension_numbers = #tpu.dot_dimension_numbers<[1], [0], [0], [1], [0, 0, 1, 1], [], []>} : vector<8x32xbf16>, vector<32x8xbf16>, vector<8x8xf32> -> vector<8x8xf32>
    %c0_15 = arith.constant 0 : index
    %c0_16 = arith.constant 0 : index
    %20 = vector.load %arg7[%c0_15, %c0_16] : memref<1x8xf32, #tpu.memory_space<vmem>>, vector<1x8xf32>
    %21 = vector.broadcast %20 : vector<1x8xf32> to vector<8x8xf32>
    %22 = arith.addf %19, %21 : vector<8x8xf32>
    %cst_17 = arith.constant 0.000000e+00 : f32
    %23 = vector.broadcast %cst_17 : f32 to vector<8x8xf32>
    %24 = arith.maximumf %22, %23 : vector<8x8xf32>
    %c0_18 = arith.constant 0 : index
    %c0_19 = arith.constant 0 : index
    %25 = vector.load %arg8[%c0_18, %c0_19] : memref<8x8xf32, #tpu.memory_space<vmem>>, vector<8x8xf32>
    tpu.vector_store %arg8[%c0_18, %c0_19], %24 {strides = array<i32>} : memref<8x8xf32, #tpu.memory_space<vmem>>, vector<8x8xf32>,
    return
  }
  func.func @transform_0(%arg0: i32) -> (i32, i32) {
    %c0_i32 = arith.constant 0 : i32
    %c0_i32_0 = arith.constant 0 : i32
    return %arg0, %c0_i32 : i32, i32
  }
  func.func @transform_1(%arg0: i32) -> (i32, i32) {
    %c0_i32 = arith.constant 0 : i32
    %c0_i32_0 = arith.constant 0 : i32
    %c0_i32_1 = arith.constant 0 : i32
    return %c0_i32, %c0_i32_0 : i32, i32
  }
  func.func @transform_2(%arg0: i32) -> (i32, i32) {
    %c0_i32 = arith.constant 0 : i32
    %c0_i32_0 = arith.constant 0 : i32
    %c0_i32_1 = arith.constant 0 : i32
    return %c0_i32, %c0_i32_0 : i32, i32
  }
  func.func @transform_3(%arg0: i32) -> (i32, i32) {
    %c0_i32 = arith.constant 0 : i32
    %c0_i32_0 = arith.constant 0 : i32
    %c0_i32_1 = arith.constant 0 : i32
    return %c0_i32, %c0_i32_0 : i32, i32
  }
  func.func @transform_4(%arg0: i32) -> (i32, i32) {
    %c0_i32 = arith.constant 0 : i32
    %c0_i32_0 = arith.constant 0 : i32
    %c0_i32_1 = arith.constant 0 : i32
    return %c0_i32, %c0_i32_0 : i32, i32
  }
  func.func @transform_5(%arg0: i32) -> (i32, i32) {
    %c0_i32 = arith.constant 0 : i32
    %c0_i32_0 = arith.constant 0 : i32
    %c0_i32_1 = arith.constant 0 : i32
    return %c0_i32, %c0_i32_0 : i32, i32
  }
  func.func @transform_6(%arg0: i32) -> (i32, i32) {
    %c0_i32 = arith.constant 0 : i32
    %c0_i32_0 = arith.constant 0 : i32
    %c0_i32_1 = arith.constant 0 : i32
    return %c0_i32, %c0_i32_0 : i32, i32
  }
  func.func @transform_7(%arg0: i32) -> (i32, i32) {
    %c0_i32 = arith.constant 0 : i32
    %c0_i32_0 = arith.constant 0 : i32
    return %arg0, %c0_i32 : i32, i32
  }
}

module attributes {stable_mosaic.version = 11 : i64} {
  func.func @_encoder_kernel(%arg0: i32, %arg1: memref<8x16xf32, #tpu.memory_space<vmem>>, %arg2: memref<16x32xbf16, #tpu.memory_space<vmem>>, %arg3: memref<1x32xf32, #tpu.memory_space<vmem>>, %arg4: memref<32x32xbf16, #tpu.memory_space<vmem>>, %arg5: memref<1x32xf32, #tpu.memory_space<vmem>>, %arg6: memref<32x8xbf16, #tpu.memory_space<vmem>>, %arg7: memref<1x8xf32, #tpu.memory_space<vmem>>, %arg8: memref<8x8xf32, #tpu.memory_space<vmem>>) attributes {dimension_semantics = [#tpu.dimension_semantics<parallel>], iteration_bounds = array<i64: 1>, scalar_prefetch = 0 : i64, scratch_operands = 0 : i64, tpu.core_type = #tpu.core_type<tc>, window_params = [{transform_indices = @transform_0, window_bounds = array<i64: 8, 16>}, {pipeline_mode = #tpu.pipeline_mode<synchronous>, transform_indices = @transform_1, window_bounds = array<i64: 16, 32>}, {pipeline_mode = #tpu.pipeline_mode<synchronous>, transform_indices = @transform_2, window_bounds = array<i64: 1, 32>}, {pipeline_mode = #tpu.pipeline_mode<synchronous>, transform_indices = @transform_3, window_bounds = array<i64: 32, 32>}, {pipeline_mode = #tpu.pipeline_mode<synchronous>, transform_indices = @transform_4, window_bounds = array<i64: 1, 32>}, {pipeline_mode = #tpu.pipeline_mode<synchronous>, transform_indices = @transform_5, window_bounds = array<i64: 32, 8>}, {pipeline_mode = #tpu.pipeline_mode<synchronous>, transform_indices = @transform_6, window_bounds = array<i64: 1, 8>}, {transform_indices = @transform_7, window_bounds = array<i64: 8, 8>}]} {
    %c0 = arith.constant 0 : index
    %c0_0 = arith.constant 0 : index
    %0 = vector.load %arg1[%c0, %c0_0] : memref<8x16xf32, #tpu.memory_space<vmem>>, vector<8x16xf32>
    %1 = arith.truncf %0 : vector<8x16xf32> to vector<8x16xbf16>
    %c0_1 = arith.constant 0 : index
    %c0_2 = arith.constant 0 : index
    %2 = vector.load %arg2[%c0_1, %c0_2] : memref<16x32xbf16, #tpu.memory_space<vmem>>, vector<16x32xbf16>
    %cst = arith.constant dense<0.000000e+00> : vector<8x32xf32>
    %3 = tpu.matmul %1, %2, %cst {dimension_numbers = #tpu.dot_dimension_numbers<[1], [0], [0], [1], [0, 0, 1, 1], [], []>} : vector<8x16xbf16>, vector<16x32xbf16>, vector<8x32xf32> -> vector<8x32xf32>
    %c0_3 = arith.constant 0 : index
    %c0_4 = arith.constant 0 : index
    %4 = vector.load %arg3[%c0_3, %c0_4] : memref<1x32xf32, #tpu.memory_space<vmem>>, vector<1x32xf32>
    %5 = vector.broadcast %4 : vector<1x32xf32> to vector<8x32xf32>
    %6 = arith.addf %3, %5 : vector<8x32xf32>
    %cst_5 = arith.constant 0.000000e+00 : f32
    %7 = vector.broadcast %cst_5 : f32 to vector<8x32xf32>
    %8 = arith.maximumf %6, %7 : vector<8x32xf32>
    %9 = arith.truncf %8 : vector<8x32xf32> to vector<8x32xbf16>
    %c0_6 = arith.constant 0 : index
    %c0_7 = arith.constant 0 : index
    %10 = vector.load %arg4[%c0_6, %c0_7] : memref<32x32xbf16, #tpu.memory_space<vmem>>, vector<32x32xbf16>
    %cst_8 = arith.constant dense<0.000000e+00> : vector<8x32xf32>
    %11 = tpu.matmul %9, %10, %cst_8 {dimension_numbers = #tpu.dot_dimension_numbers<[1], [0], [0], [1], [0, 0, 1, 1], [], []>} : vector<8x32xbf16>, vector<32x32xbf16>, vector<8x32xf32> -> vector<8x32xf32>
    %c0_9 = arith.constant 0 : index
    %c0_10 = arith.constant 0 : index
    %12 = vector.load %arg5[%c0_9, %c0_10] : memref<1x32xf32, #tpu.memory_space<vmem>>, vector<1x32xf32>
    %13 = vector.broadcast %12 : vector<1x32xf32> to vector<8x32xf32>
    %14 = arith.addf %11, %13 : vector<8x32xf32>
    %cst_11 = arith.constant 0.000000e+00 : f32
    %15 = vector.broadcast %cst_11 : f32 to vector<8x32xf32>
    %16 = arith.maximumf %14, %15 : vector<8x32xf32>
    %17 = arith.truncf %16 : vector<8x32xf32> to vector<8x32xbf16>
    %c0_12 = arith.constant 0 : index
    %c0_13 = arith.constant 0 : index
    %18 = vector.load %arg6[%c0_12, %c0_13] : memref<32x8xbf16, #tpu.memory_space<vmem>>, vector<32x8xbf16>
    %cst_14 = arith.constant dense<0.000000e+00> : vector<8x8xf32>
    %19 = tpu.matmul %17, %18, %cst_14 {dimension_numbers = #tpu.dot_dimension_numbers<[1], [0], [0], [1], [0, 0, 1, 1], [], []>} : vector<8x32xbf16>, vector<32x8xbf16>, vector<8x8xf32> -> vector<8x8xf32>
    %c0_15 = arith.constant 0 : index
    %c0_16 = arith.constant 0 : index
    %20 = vector.load %arg7[%c0_15, %c0_16] : memref<1x8xf32, #tpu.memory_space<vmem>>, vector<1x8xf32>
    %21 = vector.broadcast %20 : vector<1x8xf32> to vector<8x8xf32>
    %22 = arith.addf %19, %21 : vector<8x8xf32>
    %cst_17 = arith.constant 0.000000e+00 : f32
    %23 = vector.broadcast %cst_17 : f32 to vector<8x8xf32>
    %24 = arith.maximumf %22, %23 : vector<8x8xf32>
    %c0_18 = arith.constant 0 : index
    %c0_19 = arith.constant 0 : index
    %25 = vector.load %arg8[%c0_18, %c0_19] : memref<8x8xf32, #tpu.memory_space<vmem>>, vector<8x8xf32>
    tpu.vector_store %arg8[%c0_18, %c0_19], %24 {strides = array<i32>} : memref<8x8xf32, #tpu.memory_space<vmem>>, vector<8x8xf32>,
    return
  }
  func.func @transform_0(%arg0: i32) -> (i32, i32) {
    %c0_i32 = arith.constant 0 : i32
    %c0_i32_0 = arith.constant 0 : i32
    return %arg0, %c0_i32 : i32, i32
  }
  func.func @transform_1(%arg0: i32) -> (i32, i32) {
    %c0_i32 = arith.constant 0 : i32
    %c0_i32_0 = arith.constant 0 : i32
    %c0_i32_1 = arith.constant 0 : i32
    return %c0_i32, %c0_i32_0 : i32, i32
  }
  func.func @transform_2(%arg0: i32) -> (i32, i32) {
    %c0_i32 = arith.constant 0 : i32
    %c0_i32_0 = arith.constant 0 : i32
    %c0_i32_1 = arith.constant 0 : i32
    return %c0_i32, %c0_i32_0 : i32, i32
  }
  func.func @transform_3(%arg0: i32) -> (i32, i32) {
    %c0_i32 = arith.constant 0 : i32
    %c0_i32_0 = arith.constant 0 : i32
    %c0_i32_1 = arith.constant 0 : i32
    return %c0_i32, %c0_i32_0 : i32, i32
  }
  func.func @transform_4(%arg0: i32) -> (i32, i32) {
    %c0_i32 = arith.constant 0 : i32
    %c0_i32_0 = arith.constant 0 : i32
    %c0_i32_1 = arith.constant 0 : i32
    return %c0_i32, %c0_i32_0 : i32, i32
  }
  func.func @transform_5(%arg0: i32) -> (i32, i32) {
    %c0_i32 = arith.constant 0 : i32
    %c0_i32_0 = arith.constant 0 : i32
    %c0_i32_1 = arith.constant 0 : i32
    return %c0_i32, %c0_i32_0 : i32, i32
  }
  func.func @transform_6(%arg0: i32) -> (i32, i32) {
    %c0_i32 = arith.constant 0 : i32
    %c0_i32_0 = arith.constant 0 : i32
    %c0_i32_1 = arith.constant 0 : i32
    return %c0_i32, %c0_i32_0 : i32, i32
  }
  func.func @transform_7(%arg0: i32) -> (i32, i32) {
    %c0_i32 = arith.constant 0 : i32
    %c0_i32_0 = arith.constant 0 : i32
    return %arg0, %c0_i32 : i32, i32
  }
}

</mosaic_0001>

<bundles_post_ra>
// kernel: _encoder_forward_impl.1
= control target key start
LH: loop header
LB: loop body
LE: loop exit
PB: predicated region body
PF: predicated region fallthrough
CT: control target
= control target key end

     0   :  { %12 = vsyncpa [#allocation3], 0  ;;  %s376_s0 = inlined_call_operand.hbm [shape: f32[8,16], index: 0, kind: input, shape index: {}]   ;;  %s377_s1 = inlined_call_operand.hbm [shape: bf16[16,32], index: 1, kind: input, shape index: {}]   ;;  %s378_s2 = inlined_call_operand.vmem [shape: f32[1,32], index: 2, kind: input, shape index: {}]   ;;  %s379_s3 = inlined_call_operand.vmem [shape: bf16[32,32], index: 3, kind: input, shape index: {}]   ;;  %s380_s4 = inlined_call_operand.vmem [shape: f32[1,32], index: 4, kind: input, shape index: {}]   ;;  %s381_s5 = inlined_call_operand.vmem [shape: bf16[32,8], index: 5, kind: input, shape index: {}]   ;;  %s382_s6 = inlined_call_operand.vmem [shape: f32[1,8], index: 6, kind: input, shape index: {}]   ;;  %s383_s7 = inlined_call_operand.hbm [shape: f32[8,8], index: 7, kind: output, shape index: {}]  }
   0x1   :  { %13 = vsyncpa [#allocation6], 0 }
   0x2   :  { %14 = vsyncpa [#allocation4], 0  ;;  %s20_s26 = sshll.u32 %s376_s0, 4  ;;  %s301_s27 = smov [#allocation2]   ;;  %s21_s26 = int_to_ptr.hbm [resolvable:$true] %s20_s26 }
   0x3   :  { %s22_s28 = sshll.u32 %s301_s27, 4  ;;  %s30_s8 = sshll.u32 %s377_s1, 4  ;;  %s23_s28 = int_to_ptr.vmem [resolvable:$true] %s22_s28  ;;  %s31_s8 = int_to_ptr.hbm [resolvable:$true] %s30_s8 }
   0x4   :  { %25 = dma.hbm_to_vmem [thread:$0]  %s21_s26, 128, %s23_s28, [#allocation3]  }
   0x5   :  { %s302_s9 = smov [#allocation5]   ;;  %s303_s11 = smov 64  }
   0x6   :  { %s32_s10 = sshll.u32 %s302_s9, 4  ;;  %s304_s12 = smov 4   ;;  %s33_s10 = int_to_ptr.vmem [resolvable:$true] %s32_s10 }
   0x7   :  { %38 = dma.hbm_to_vmem [thread:$0]  %s31_s8, 128, %s33_s10, [#allocation6], %s303_s11, %s303_s11, %s304_s12  }
   0x8   :  { %295 = dma.done.wait [#allocation3], 128  }
   0x9   :  { %296 = vsyncadd [#allocation3], 4294967168 }
   0xa   :  { %297 = dma.done.wait [#allocation6], 128  }
   0xb   :  { %298 = vsyncadd [#allocation6], 4294967168  ;;  %v210_v0 = vld [vmem:[#allocation5] sm:$0xff]  ;;  %v58_v1 = vld [vmem:[#allocation2] sm:$0xff]  ;;  %vm72_vm0 = vcmask 130048   ;;  %vm111_vm1 = vcmask 261120  }
   0xc   :  { %v59_v2 = vpack.c.bf16 %v58_v1, %v58_v1  ;;  %83 = vmatpush.bf16.msra.mxu0 %v210_v0  ;;  %v212_v3 = vld [vmem:[%s379_s3 + $0x8] sm:$0xff]  ;;  %v211_v4 = vld [vmem:[%s379_s3] sm:$0xff]  ;;  %s305_s23 = smov [#allocation7]   ;;  %s176_s26 = sshll.u32 %s383_s7, 4  ;;  %vm167_vm2 = vcmask 64512   ;;  %s177_s26 = int_to_ptr.hbm [resolvable:$true] %s176_s26 }
   0xd   :  { %121 = vmatpush.bf16.msra.mxu1 %v212_v3  ;;  %v220_v5 = vld [vmem:[%s378_s2] ss:$0 sm:$0xff]  ;;  %v214_v11 = vld [vmem:[%s381_s5 + $0x8] sm:$0xff]  ;;  %s174_s24 = sshll.u32 %s305_s23, 4  ;;  %s175_s24 = int_to_ptr.vmem [resolvable:$true] %s174_s24 }
   0xe   :  { %159 = vmatpush.bf16.msra.mxu2 %v214_v11  ;;  %v213_v12 = vld [vmem:[%s381_s5] sm:$0xff] }
   0xf   :  { %191 = vmatmul.msk.bf16.vlgmr.msra.gmra.mxu0 %vm72_vm0, %v59_v2  ;;  %v221_v13 = vld [vmem:[%s380_s4] ss:$0 sm:$0xff] }
  0x10   :  { %v222_v19 = vld [vmem:[%s382_s6] ss:$0 sm:$0xff] }
  0x11   :  { %122 = vmatpush.bf16.msra.mxu1 %v211_v4 }
  0x12   :  { %160 = vmatpush.bf16.msra.mxu2 %v213_v12 }
  0x8c   :  { %v85_v6 = vpop.f32.mrf.mxu0 }
  0x8d   :  { %v86_v7 = vadd.f32 %v220_v5, %v85_v6 }
  0x8f   :  { %v89_v8 = vmax.f32 %v86_v7, 0.0 }
  0x91   :  { %v90_v9 = vpack.c.bf16 %v89_v8, %v89_v8 }
  0x93   :  { %200 = vmatmul.msk.bf16.vlgmr.msra.gmra.mxu1 %vm111_vm1, %v90_v9 }
  0x94   :  { %v87_v10 = vpop.f32.mrf.mxu0 }
 0x110   :  { %v124_v14 = vpop.f32.mrf.mxu1 }
 0x111   :  { %v125_v15 = vadd.f32 %v221_v13, %v124_v14 }
 0x113   :  { %v128_v16 = vmax.f32 %v125_v15, 0.0 }
 0x115   :  { %v129_v17 = vpack.c.bf16 %v128_v16, %v128_v16 }
 0x117   :  { %209 = vmatmul.msk.bf16.vlgmr.msra.gmra.mxu2 %vm111_vm1, %v129_v17 }
 0x118   :  { %v126_v18 = vpop.f32.mrf.mxu1 }
 0x19a   :  { %v162_v20 = vpop.f32.mrf.mxu2 }
 0x19b   :  { %v163_v21 = vadd.f32 %v222_v19, %v162_v20 }
 0x19d   :  { %v166_v22 = vmax.f32 %v163_v21, 0.0 }
 0x19f   :  { %168 = vst.msk [vmem:[#allocation7] sm:$0xff] %vm167_vm2, %v166_v22 }
 0x1a0   :  { %179 = dma.vmem_to_hbm [thread:$0]  %s175_s24, 128, %s177_s26, [#allocation4]  }
 0x1a2   :  { %v164_v23 = vpop.f32.mrf.mxu2 }
 0x1a3   :  { %299 = dma.done.wait [#allocation4], 128  }
 0x1a4   :  { %300 = vsyncadd [#allocation4], 4294967168 }
 0x1a5   :  { %184 = vsyncpa [#allocation3], 1 }
 0x1a6   :  { %185 = vsyncpa [#allocation6], 1 }
 0x1a7   :  { %186 = vsyncpa [#allocation4], 1 }

// kernel: _encoder_forward_impl.1
= control target key start
LH: loop header
LB: loop body
LE: loop exit
PB: predicated region body
PF: predicated region fallthrough
CT: control target
= control target key end

     0   :  { %12 = vsyncpa [#allocation3], 0  ;;  %s376_s0 = inlined_call_operand.hbm [shape: f32[8,16], index: 0, kind: input, shape index: {}]   ;;  %s377_s1 = inlined_call_operand.hbm [shape: bf16[16,32], index: 1, kind: input, shape index: {}]   ;;  %s378_s2 = inlined_call_operand.vmem [shape: f32[1,32], index: 2, kind: input, shape index: {}]   ;;  %s379_s3 = inlined_call_operand.vmem [shape: bf16[32,32], index: 3, kind: input, shape index: {}]   ;;  %s380_s4 = inlined_call_operand.vmem [shape: f32[1,32], index: 4, kind: input, shape index: {}]   ;;  %s381_s5 = inlined_call_operand.vmem [shape: bf16[32,8], index: 5, kind: input, shape index: {}]   ;;  %s382_s6 = inlined_call_operand.vmem [shape: f32[1,8], index: 6, kind: input, shape index: {}]   ;;  %s383_s7 = inlined_call_operand.hbm [shape: f32[8,8], index: 7, kind: output, shape index: {}]  }
   0x1   :  { %13 = vsyncpa [#allocation6], 0 }
   0x2   :  { %14 = vsyncpa [#allocation4], 0  ;;  %s20_s26 = sshll.u32 %s376_s0, 4  ;;  %s301_s27 = smov [#allocation2]   ;;  %s21_s26 = int_to_ptr.hbm [resolvable:$true] %s20_s26 }
   0x3   :  { %s22_s28 = sshll.u32 %s301_s27, 4  ;;  %s30_s8 = sshll.u32 %s377_s1, 4  ;;  %s23_s28 = int_to_ptr.vmem [resolvable:$true] %s22_s28  ;;  %s31_s8 = int_to_ptr.hbm [resolvable:$true] %s30_s8 }
   0x4   :  { %25 = dma.hbm_to_vmem [thread:$0]  %s21_s26, 128, %s23_s28, [#allocation3]  }
   0x5   :  { %s302_s9 = smov [#allocation5]   ;;  %s303_s11 = smov 64  }
   0x6   :  { %s32_s10 = sshll.u32 %s302_s9, 4  ;;  %s304_s12 = smov 4   ;;  %s33_s10 = int_to_ptr.vmem [resolvable:$true] %s32_s10 }
   0x7   :  { %38 = dma.hbm_to_vmem [thread:$0]  %s31_s8, 128, %s33_s10, [#allocation6], %s303_s11, %s303_s11, %s304_s12  }
   0x8   :  { %295 = dma.done.wait [#allocation3], 128  }
   0x9   :  { %296 = vsyncadd [#allocation3], 4294967168 }
   0xa   :  { %297 = dma.done.wait [#allocation6], 128  }
   0xb   :  { %298 = vsyncadd [#allocation6], 4294967168  ;;  %v210_v0 = vld [vmem:[#allocation5] sm:$0xff]  ;;  %v58_v1 = vld [vmem:[#allocation2] sm:$0xff]  ;;  %vm72_vm0 = vcmask 130048   ;;  %vm111_vm1 = vcmask 261120  }
   0xc   :  { %v59_v2 = vpack.c.bf16 %v58_v1, %v58_v1  ;;  %83 = vmatpush.bf16.msra.mxu0 %v210_v0  ;;  %v212_v3 = vld [vmem:[%s379_s3 + $0x8] sm:$0xff]  ;;  %v211_v4 = vld [vmem:[%s379_s3] sm:$0xff]  ;;  %s305_s23 = smov [#allocation7]   ;;  %s176_s26 = sshll.u32 %s383_s7, 4  ;;  %vm167_vm2 = vcmask 64512   ;;  %s177_s26 = int_to_ptr.hbm [resolvable:$true] %s176_s26 }
   0xd   :  { %121 = vmatpush.bf16.msra.mxu1 %v212_v3  ;;  %v220_v5 = vld [vmem:[%s378_s2] ss:$0 sm:$0xff]  ;;  %v214_v11 = vld [vmem:[%s381_s5 + $0x8] sm:$0xff]  ;;  %s174_s24 = sshll.u32 %s305_s23, 4  ;;  %s175_s24 = int_to_ptr.vmem [resolvable:$true] %s174_s24 }
   0xe   :  { %159 = vmatpush.bf16.msra.mxu2 %v214_v11  ;;  %v213_v12 = vld [vmem:[%s381_s5] sm:$0xff] }
   0xf   :  { %191 = vmatmul.msk.bf16.vlgmr.msra.gmra.mxu0 %vm72_vm0, %v59_v2  ;;  %v221_v13 = vld [vmem:[%s380_s4] ss:$0 sm:$0xff] }
  0x10   :  { %v222_v19 = vld [vmem:[%s382_s6] ss:$0 sm:$0xff] }
  0x11   :  { %122 = vmatpush.bf16.msra.mxu1 %v211_v4 }
  0x12   :  { %160 = vmatpush.bf16.msra.mxu2 %v213_v12 }
  0x8c   :  { %v85_v6 = vpop.f32.mrf.mxu0 }
  0x8d   :  { %v86_v7 = vadd.f32 %v220_v5, %v85_v6 }
  0x8f   :  { %v89_v8 = vmax.f32 %v86_v7, 0.0 }
  0x91   :  { %v90_v9 = vpack.c.bf16 %v89_v8, %v89_v8 }
  0x93   :  { %200 = vmatmul.msk.bf16.vlgmr.msra.gmra.mxu1 %vm111_vm1, %v90_v9 }
  0x94   :  { %v87_v10 = vpop.f32.mrf.mxu0 }
 0x110   :  { %v124_v14 = vpop.f32.mrf.mxu1 }
 0x111   :  { %v125_v15 = vadd.f32 %v221_v13, %v124_v14 }
 0x113   :  { %v128_v16 = vmax.f32 %v125_v15, 0.0 }
 0x115   :  { %v129_v17 = vpack.c.bf16 %v128_v16, %v128_v16 }
 0x117   :  { %209 = vmatmul.msk.bf16.vlgmr.msra.gmra.mxu2 %vm111_vm1, %v129_v17 }
 0x118   :  { %v126_v18 = vpop.f32.mrf.mxu1 }
 0x19a   :  { %v162_v20 = vpop.f32.mrf.mxu2 }
 0x19b   :  { %v163_v21 = vadd.f32 %v222_v19, %v162_v20 }
 0x19d   :  { %v166_v22 = vmax.f32 %v163_v21, 0.0 }
 0x19f   :  { %168 = vst.msk [vmem:[#allocation7] sm:$0xff] %vm167_vm2, %v166_v22 }
 0x1a0   :  { %179 = dma.vmem_to_hbm [thread:$0]  %s175_s24, 128, %s177_s26, [#allocation4]  }
 0x1a2   :  { %v164_v23 = vpop.f32.mrf.mxu2 }
 0x1a3   :  { %299 = dma.done.wait [#allocation4], 128  }
 0x1a4   :  { %300 = vsyncadd [#allocation4], 4294967168 }
 0x1a5   :  { %184 = vsyncpa [#allocation3], 1 }
 0x1a6   :  { %185 = vsyncpa [#allocation6], 1 }
 0x1a7   :  { %186 = vsyncpa [#allocation4], 1 }

// kernel: _encoder_forward_impl.1
= control target key start
LH: loop header
LB: loop body
LE: loop exit
PB: predicated region body
PF: predicated region fallthrough
CT: control target
= control target key end

     0   :  { %12 = vsyncpa [#allocation3], 0  ;;  %s376_s0 = inlined_call_operand.hbm [shape: f32[8,16], index: 0, kind: input, shape index: {}]   ;;  %s377_s1 = inlined_call_operand.hbm [shape: bf16[16,32], index: 1, kind: input, shape index: {}]   ;;  %s378_s2 = inlined_call_operand.vmem [shape: f32[1,32], index: 2, kind: input, shape index: {}]   ;;  %s379_s3 = inlined_call_operand.vmem [shape: bf16[32,32], index: 3, kind: input, shape index: {}]   ;;  %s380_s4 = inlined_call_operand.vmem [shape: f32[1,32], index: 4, kind: input, shape index: {}]   ;;  %s381_s5 = inlined_call_operand.vmem [shape: bf16[32,8], index: 5, kind: input, shape index: {}]   ;;  %s382_s6 = inlined_call_operand.vmem [shape: f32[1,8], index: 6, kind: input, shape index: {}]   ;;  %s383_s7 = inlined_call_operand.hbm [shape: f32[8,8], index: 7, kind: output, shape index: {}]  }
   0x1   :  { %13 = vsyncpa [#allocation6], 0 }
   0x2   :  { %14 = vsyncpa [#allocation4], 0  ;;  %s20_s26 = sshll.u32 %s376_s0, 4  ;;  %s301_s27 = smov [#allocation2]   ;;  %s21_s26 = int_to_ptr.hbm [resolvable:$true] %s20_s26 }
   0x3   :  { %s22_s28 = sshll.u32 %s301_s27, 4  ;;  %s30_s8 = sshll.u32 %s377_s1, 4  ;;  %s23_s28 = int_to_ptr.vmem [resolvable:$true] %s22_s28  ;;  %s31_s8 = int_to_ptr.hbm [resolvable:$true] %s30_s8 }
   0x4   :  { %25 = dma.hbm_to_vmem [thread:$0]  %s21_s26, 128, %s23_s28, [#allocation3]  }
   0x5   :  { %s302_s9 = smov [#allocation5]   ;;  %s303_s11 = smov 64  }
   0x6   :  { %s32_s10 = sshll.u32 %s302_s9, 4  ;;  %s304_s12 = smov 4   ;;  %s33_s10 = int_to_ptr.vmem [resolvable:$true] %s32_s10 }
   0x7   :  { %38 = dma.hbm_to_vmem [thread:$0]  %s31_s8, 128, %s33_s10, [#allocation6], %s303_s11, %s303_s11, %s304_s12  }
   0x8   :  { %295 = dma.done.wait [#allocation3], 128  }
   0x9   :  { %296 = vsyncadd [#allocation3], 4294967168 }
   0xa   :  { %297 = dma.done.wait [#allocation6], 128  }
   0xb   :  { %298 = vsyncadd [#allocation6], 4294967168  ;;  %v210_v0 = vld [vmem:[#allocation5] sm:$0xff]  ;;  %v58_v1 = vld [vmem:[#allocation2] sm:$0xff]  ;;  %vm72_vm0 = vcmask 130048   ;;  %vm111_vm1 = vcmask 261120  }
   0xc   :  { %v59_v2 = vpack.c.bf16 %v58_v1, %v58_v1  ;;  %83 = vmatpush.bf16.msra.mxu0 %v210_v0  ;;  %v212_v3 = vld [vmem:[%s379_s3 + $0x8] sm:$0xff]  ;;  %v211_v4 = vld [vmem:[%s379_s3] sm:$0xff]  ;;  %s305_s23 = smov [#allocation7]   ;;  %s176_s26 = sshll.u32 %s383_s7, 4  ;;  %vm167_vm2 = vcmask 64512   ;;  %s177_s26 = int_to_ptr.hbm [resolvable:$true] %s176_s26 }
   0xd   :  { %121 = vmatpush.bf16.msra.mxu1 %v212_v3  ;;  %v220_v5 = vld [vmem:[%s378_s2] ss:$0 sm:$0xff]  ;;  %v214_v11 = vld [vmem:[%s381_s5 + $0x8] sm:$0xff]  ;;  %s174_s24 = sshll.u32 %s305_s23, 4  ;;  %s175_s24 = int_to_ptr.vmem [resolvable:$true] %s174_s24 }
   0xe   :  { %159 = vmatpush.bf16.msra.mxu2 %v214_v11  ;;  %v213_v12 = vld [vmem:[%s381_s5] sm:$0xff] }
   0xf   :  { %191 = vmatmul.msk.bf16.vlgmr.msra.gmra.mxu0 %vm72_vm0, %v59_v2  ;;  %v221_v13 = vld [vmem:[%s380_s4] ss:$0 sm:$0xff] }
  0x10   :  { %v222_v19 = vld [vmem:[%s382_s6] ss:$0 sm:$0xff] }
  0x11   :  { %122 = vmatpush.bf16.msra.mxu1 %v211_v4 }
  0x12   :  { %160 = vmatpush.bf16.msra.mxu2 %v213_v12 }
  0x8c   :  { %v85_v6 = vpop.f32.mrf.mxu0 }
  0x8d   :  { %v86_v7 = vadd.f32 %v220_v5, %v85_v6 }
  0x8f   :  { %v89_v8 = vmax.f32 %v86_v7, 0.0 }
  0x91   :  { %v90_v9 = vpack.c.bf16 %v89_v8, %v89_v8 }
  0x93   :  { %200 = vmatmul.msk.bf16.vlgmr.msra.gmra.mxu1 %vm111_vm1, %v90_v9 }
  0x94   :  { %v87_v10 = vpop.f32.mrf.mxu0 }
 0x110   :  { %v124_v14 = vpop.f32.mrf.mxu1 }
 0x111   :  { %v125_v15 = vadd.f32 %v221_v13, %v124_v14 }
 0x113   :  { %v128_v16 = vmax.f32 %v125_v15, 0.0 }
 0x115   :  { %v129_v17 = vpack.c.bf16 %v128_v16, %v128_v16 }
 0x117   :  { %209 = vmatmul.msk.bf16.vlgmr.msra.gmra.mxu2 %vm111_vm1, %v129_v17 }
 0x118   :  { %v126_v18 = vpop.f32.mrf.mxu1 }
 0x19a   :  { %v162_v20 = vpop.f32.mrf.mxu2 }
 0x19b   :  { %v163_v21 = vadd.f32 %v222_v19, %v162_v20 }
 0x19d   :  { %v166_v22 = vmax.f32 %v163_v21, 0.0 }
 0x19f   :  { %168 = vst.msk [vmem:[#allocation7] sm:$0xff] %vm167_vm2, %v166_v22 }
 0x1a0   :  { %179 = dma.vmem_to_hbm [thread:$0]  %s175_s24, 128, %s177_s26, [#allocation4]  }
 0x1a2   :  { %v164_v23 = vpop.f32.mrf.mxu2 }
 0x1a3   :  { %299 = dma.done.wait [#allocation4], 128  }
 0x1a4   :  { %300 = vsyncadd [#allocation4], 4294967168 }
 0x1a5   :  { %184 = vsyncpa [#allocation3], 1 }
 0x1a6   :  { %185 = vsyncpa [#allocation6], 1 }
 0x1a7   :  { %186 = vsyncpa [#allocation4], 1 }

// kernel: _encoder_forward_impl.1
= control target key start
LH: loop header
LB: loop body
LE: loop exit
PB: predicated region body
PF: predicated region fallthrough
CT: control target
= control target key end

     0   :  { %12 = vsyncpa [#allocation3], 0  ;;  %s376_s0 = inlined_call_operand.hbm [shape: f32[8,16], index: 0, kind: input, shape index: {}]   ;;  %s377_s1 = inlined_call_operand.hbm [shape: bf16[16,32], index: 1, kind: input, shape index: {}]   ;;  %s378_s2 = inlined_call_operand.vmem [shape: f32[1,32], index: 2, kind: input, shape index: {}]   ;;  %s379_s3 = inlined_call_operand.vmem [shape: bf16[32,32], index: 3, kind: input, shape index: {}]   ;;  %s380_s4 = inlined_call_operand.vmem [shape: f32[1,32], index: 4, kind: input, shape index: {}]   ;;  %s381_s5 = inlined_call_operand.vmem [shape: bf16[32,8], index: 5, kind: input, shape index: {}]   ;;  %s382_s6 = inlined_call_operand.vmem [shape: f32[1,8], index: 6, kind: input, shape index: {}]   ;;  %s383_s7 = inlined_call_operand.hbm [shape: f32[8,8], index: 7, kind: output, shape index: {}]  }
   0x1   :  { %13 = vsyncpa [#allocation6], 0 }
   0x2   :  { %14 = vsyncpa [#allocation4], 0  ;;  %s20_s26 = sshll.u32 %s376_s0, 4  ;;  %s301_s27 = smov [#allocation2]   ;;  %s21_s26 = int_to_ptr.hbm [resolvable:$true] %s20_s26 }
   0x3   :  { %s22_s28 = sshll.u32 %s301_s27, 4  ;;  %s30_s8 = sshll.u32 %s377_s1, 4  ;;  %s23_s28 = int_to_ptr.vmem [resolvable:$true] %s22_s28  ;;  %s31_s8 = int_to_ptr.hbm [resolvable:$true] %s30_s8 }
   0x4   :  { %25 = dma.hbm_to_vmem [thread:$0]  %s21_s26, 128, %s23_s28, [#allocation3]  }
   0x5   :  { %s302_s9 = smov [#allocation5]   ;;  %s303_s11 = smov 64  }
   0x6   :  { %s32_s10 = sshll.u32 %s302_s9, 4  ;;  %s304_s12 = smov 4   ;;  %s33_s10 = int_to_ptr.vmem [resolvable:$true] %s32_s10 }
   0x7   :  { %38 = dma.hbm_to_vmem [thread:$0]  %s31_s8, 128, %s33_s10, [#allocation6], %s303_s11, %s303_s11, %s304_s12  }
   0x8   :  { %295 = dma.done.wait [#allocation3], 128  }
   0x9   :  { %296 = vsyncadd [#allocation3], 4294967168 }
   0xa   :  { %297 = dma.done.wait [#allocation6], 128  }
   0xb   :  { %298 = vsyncadd [#allocation6], 4294967168  ;;  %v210_v0 = vld [vmem:[#allocation5] sm:$0xff]  ;;  %v58_v1 = vld [vmem:[#allocation2] sm:$0xff]  ;;  %vm72_vm0 = vcmask 130048   ;;  %vm111_vm1 = vcmask 261120  }
   0xc   :  { %v59_v2 = vpack.c.bf16 %v58_v1, %v58_v1  ;;  %83 = vmatpush.bf16.msra.mxu0 %v210_v0  ;;  %v212_v3 = vld [vmem:[%s379_s3 + $0x8] sm:$0xff]  ;;  %v211_v4 = vld [vmem:[%s379_s3] sm:$0xff]  ;;  %s305_s23 = smov [#allocation7]   ;;  %s176_s26 = sshll.u32 %s383_s7, 4  ;;  %vm167_vm2 = vcmask 64512   ;;  %s177_s26 = int_to_ptr.hbm [resolvable:$true] %s176_s26 }
   0xd   :  { %121 = vmatpush.bf16.msra.mxu1 %v212_v3  ;;  %v220_v5 = vld [vmem:[%s378_s2] ss:$0 sm:$0xff]  ;;  %v214_v11 = vld [vmem:[%s381_s5 + $0x8] sm:$0xff]  ;;  %s174_s24 = sshll.u32 %s305_s23, 4  ;;  %s175_s24 = int_to_ptr.vmem [resolvable:$true] %s174_s24 }
   0xe   :  { %159 = vmatpush.bf16.msra.mxu2 %v214_v11  ;;  %v213_v12 = vld [vmem:[%s381_s5] sm:$0xff] }
   0xf   :  { %191 = vmatmul.msk.bf16.vlgmr.msra.gmra.mxu0 %vm72_vm0, %v59_v2  ;;  %v221_v13 = vld [vmem:[%s380_s4] ss:$0 sm:$0xff] }
  0x10   :  { %v222_v19 = vld [vmem:[%s382_s6] ss:$0 sm:$0xff] }
  0x11   :  { %122 = vmatpush.bf16.msra.mxu1 %v211_v4 }
  0x12   :  { %160 = vmatpush.bf16.msra.mxu2 %v213_v12 }
  0x8c   :  { %v85_v6 = vpop.f32.mrf.mxu0 }
  0x8d   :  { %v86_v7 = vadd.f32 %v220_v5, %v85_v6 }
  0x8f   :  { %v89_v8 = vmax.f32 %v86_v7, 0.0 }
  0x91   :  { %v90_v9 = vpack.c.bf16 %v89_v8, %v89_v8 }
  0x93   :  { %200 = vmatmul.msk.bf16.vlgmr.msra.gmra.mxu1 %vm111_vm1, %v90_v9 }
  0x94   :  { %v87_v10 = vpop.f32.mrf.mxu0 }
 0x110   :  { %v124_v14 = vpop.f32.mrf.mxu1 }
 0x111   :  { %v125_v15 = vadd.f32 %v221_v13, %v124_v14 }
 0x113   :  { %v128_v16 = vmax.f32 %v125_v15, 0.0 }
 0x115   :  { %v129_v17 = vpack.c.bf16 %v128_v16, %v128_v16 }
 0x117   :  { %209 = vmatmul.msk.bf16.vlgmr.msra.gmra.mxu2 %vm111_vm1, %v129_v17 }
 0x118   :  { %v126_v18 = vpop.f32.mrf.mxu1 }
 0x19a   :  { %v162_v20 = vpop.f32.mrf.mxu2 }
 0x19b   :  { %v163_v21 = vadd.f32 %v222_v19, %v162_v20 }
 0x19d   :  { %v166_v22 = vmax.f32 %v163_v21, 0.0 }
 0x19f   :  { %168 = vst.msk [vmem:[#allocation7] sm:$0xff] %vm167_vm2, %v166_v22 }
 0x1a0   :  { %179 = dma.vmem_to_hbm [thread:$0]  %s175_s24, 128, %s177_s26, [#allocation4]  }
 0x1a2   :  { %v164_v23 = vpop.f32.mrf.mxu2 }
 0x1a3   :  { %299 = dma.done.wait [#allocation4], 128  }
 0x1a4   :  { %300 = vsyncadd [#allocation4], 4294967168 }
 0x1a5   :  { %184 = vsyncpa [#allocation3], 1 }
 0x1a6   :  { %185 = vsyncpa [#allocation6], 1 }
 0x1a7   :  { %186 = vsyncpa [#allocation4], 1 }

</bundles_post_ra>
